<compile_context>
chip_gen: v7x
topology: tpu7x:2x2x1
jax: 0.10.0
libtpu: 0.0.40
codegen_flags: <defaults>
</compile_context>

<pallas_src>
import jax
import jax.numpy as jnp
from jax.experimental import pallas as pl
from jax.experimental.pallas import tpu as pltpu

# ---------------- model hyper-parameters (small, consistent with the module) ---
BATCH = 256               # demo batch
SEQ = 5                   # X is (B, SEQ, F); forward uses only X[:, 0]
INPUT_FEATURES = 16
LATENT_SIZE = 32          # width_latent_state
OUTPUT_FEATURES = 4
MLP_LAYERS = 2            # encoder has 1 + MLP_LAYERS Linear layers
PI_STEPS = 2              # only thetas[0] is used in forward
LEAKY_SLOPE = 0.01        # F.leaky_relu default

# ---------------- kernel layout constants --------------------------------------
LANE = 128                                    # TPU lane width
X_WIDTH = SEQ * INPUT_FEATURES                # 80: X flattened to (B, SEQ*F)
_MAX_TILE_B = 512                             # batch rows per grid step (cap)


def _round_up(n, m):
    return ((n + m - 1) // m) * m


# Packed parameter slab (rows x 128 lanes), all region starts sublane-aligned:
#   rows [_W0_OFF,   _W0_OFF+X_WIDTH) : layer-0 weight; only rows 0:16 / cols 0:32
#                                       are real -> also performs the X[:,0] select
#   rows [_W1_OFF,   _W1_OFF+128)     : layer-1 weight, b1 folded in as row 32,
#                                       [32,32]=1 propagates the bias lane
#   rows [_WEFF_OFF, _WEFF_OFF+128)   : (layer-2 @ thetas[0]) fused weight,
#                                       fused bias (b2@theta0) as row 32
#   row   _B0_OFF                     : b0 (cols 0:32) and 1.0 at col 32 (bias lane)
_W0_OFF = 0
_W1_OFF = _round_up(_W0_OFF + X_WIDTH, 8)     # 80
_WEFF_OFF = _W1_OFF + LANE                    # 208
_B0_OFF = _WEFF_OFF + LANE                    # 336
_SLAB_ROWS = _round_up(_B0_OFF + 1, 8)        # 344


def _leaky_relu(h):
    return jnp.where(h > 0, h, LEAKY_SLOPE * h)


# ---------------- Pallas kernel -------------------------------------------------
def grl_fused_kernel(x_ref, p_ref, out_ref):
    """Encoder MLP (leaky_relu x2) with last layer fused into thetas[0].

    x_ref:   (TILE_B, x_width)  flattened input rows (only cols 0:INPUT_FEATURES used)
    p_ref:   (_SLAB_ROWS, 128)  packed, lane-dense parameter slab
    out_ref: (TILE_B, OUTPUT_FEATURES)
    """
    x = x_ref[...]
    k0 = x.shape[-1]                                      # static (block shape)

    w0 = p_ref[_W0_OFF:_W0_OFF + k0, :]                   # (k0, 128), rows >=16 are 0
    w1 = p_ref[_W1_OFF:_W1_OFF + LANE, :]                 # (128, 128), b1 in row 32
    weff = p_ref[_WEFF_OFF:_WEFF_OFF + LANE, :]           # (128, 128), fused bias row 32
    b0 = p_ref[_B0_OFF:_B0_OFF + 1, :]                    # (1, 128), 1.0 at col 32

    # layer 0: x[:, :16] @ w0 + b0 (zero weight rows do the X[:,0] select);
    # the bias row also plants the constant 1.0 bias lane at column LATENT_SIZE.
    h = jnp.dot(x, w0, preferred_element_type=jnp.float32) + b0
    h = _leaky_relu(h)                                    # padded lanes stay exactly 0

    # layer 1: latent -> latent, b1 folded in via the bias lane.
    h = _leaky_relu(jnp.dot(h, w1, preferred_element_type=jnp.float32))

    # (layer 2, no activation) fused with thetas[0]; fused bias via the bias lane.
    y = jnp.dot(h, weff, preferred_element_type=jnp.float32)
    out_ref[...] = y[:, :OUTPUT_FEATURES].astype(out_ref.dtype)


# ---------------- parameter packing ---------------------------------------------
def pack_params(params):
    """Fuse w2/theta0, fold b1/b_eff into weight rows, pack into (344, 128) f32."""
    w0, b0 = params["w0"], params["b0"]
    w1, b1 = params["w1"], params["b1"]
    w2, b2 = params["w2"], params["b2"]
    theta0 = params["theta0"]

    w_eff = w2 @ theta0                                   # (LATENT, OUTPUT)
    b_eff = b2 @ theta0                                   # (1, OUTPUT)

    slab = jnp.zeros((_SLAB_ROWS, LANE), jnp.float32)
    # layer-0 weight (rows INPUT_FEATURES:X_WIDTH stay zero -> selects X[:, 0])
    slab = slab.at[_W0_OFF:_W0_OFF + INPUT_FEATURES, 0:LATENT_SIZE].set(w0)
    # layer-0 bias row + constant bias lane
    slab = slab.at[_B0_OFF, 0:LATENT_SIZE].set(b0[0])
    slab = slab.at[_B0_OFF, LATENT_SIZE].set(1.0)
    # layer-1 weight with b1 folded in; [32,32]=1 keeps the bias lane alive
    slab = slab.at[_W1_OFF:_W1_OFF + LATENT_SIZE, 0:LATENT_SIZE].set(w1)
    slab = slab.at[_W1_OFF + LATENT_SIZE, 0:LATENT_SIZE].set(b1[0])
    slab = slab.at[_W1_OFF + LATENT_SIZE, LATENT_SIZE].set(1.0)
    # fused (layer-2 @ theta0) weight with its fused bias folded in
    slab = slab.at[_WEFF_OFF:_WEFF_OFF + LATENT_SIZE, 0:OUTPUT_FEATURES].set(w_eff)
    slab = slab.at[_WEFF_OFF + LATENT_SIZE, 0:OUTPUT_FEATURES].set(b_eff[0])
    return slab


# ---------------- tiling choice --------------------------------------------------
def _pick_tile_b(B):
    """Big tiles amortize the ~0.35us per-grid-step overhead; keep >=2 steps for
    large B so the "parallel" batch axis can land on both v7x TensorCores."""
    Bp = _round_up(B, 8)
    if Bp <= _MAX_TILE_B:
        return Bp                                  # single step (optimal on v5e/v6e)
    if Bp <= 2 * _MAX_TILE_B:
        return _round_up(pl.cdiv(Bp, 2), 8)        # exactly two big steps
    return _MAX_TILE_B


# ---------------- wrapper ---------------------------------------------------------
@jax.jit
def grl_forward(X, params_slab):
    """X: (B, SEQ, F) or (B, F); params_slab: (344, 128). Returns (B, OUTPUT_FEATURES)."""
    # Free bitcast-view; the X[:,0] select happens inside the kernel via zero
    # weight rows, so no separate XLA slice/pad pass touches HBM.
    x = X.reshape(X.shape[0], -1) if X.ndim > 2 else X
    B, W = x.shape

    tile_b = _pick_tile_b(B)
    grid = pl.cdiv(B, tile_b)                      # ragged tail rows are masked on write

    return pl.pallas_call(
        grl_fused_kernel,
        out_shape=jax.ShapeDtypeStruct((B, OUTPUT_FEATURES), jnp.float32),
        grid_spec=pltpu.PrefetchScalarGridSpec(
            num_scalar_prefetch=0,
            grid=(grid,),
            in_specs=[
                # activations: one batch tile per grid step
                pl.BlockSpec((tile_b, W), lambda i: (i, 0)),
                # packed params: single DMA, VMEM-resident across all grid steps
                pl.BlockSpec((_SLAB_ROWS, LANE), lambda i: (0, 0)),
            ],
            # output is exactly (B, 4): no padded writeback, no trailing slice
            out_specs=pl.BlockSpec((tile_b, OUTPUT_FEATURES), lambda i: (i, 0)),
        ),
        compiler_params=pltpu.CompilerParams(
            dimension_semantics=("parallel",),      # batch tiles independent (v7x megacore)
        ),
    )(x, params_slab)


# ---------------- parameter init & pure-JAX reference ----------------------------
def init_params(key):
    """Deterministic synthetic parameters (weights stored as (in, out);
    real PyTorch nn.Linear checkpoints store (out, in) and must be transposed)."""
    ks = jax.random.split(key, 8)
    scale = 0.1
    return {
        "w0": scale * jax.random.normal(ks[0], (INPUT_FEATURES, LATENT_SIZE), jnp.float32),
        "b0": scale * jax.random.normal(ks[1], (1, LATENT_SIZE), jnp.float32),
        "w1": scale * jax.random.normal(ks[2], (LATENT_SIZE, LATENT_SIZE), jnp.float32),
        "b1": scale * jax.random.normal(ks[3], (1, LATENT_SIZE), jnp.float32),
        "w2": scale * jax.random.normal(ks[4], (LATENT_SIZE, LATENT_SIZE), jnp.float32),
        "b2": scale * jax.random.normal(ks[5], (1, LATENT_SIZE), jnp.float32),
        # thetas[0..pi_steps] exist in __init__, but forward uses only thetas[0]
        "theta0": scale * jax.random.normal(ks[6], (LATENT_SIZE, OUTPUT_FEATURES), jnp.float32),
    }


def grl_forward_ref(X, params):
    """Pure-JAX reference of the (unfused) PyTorch forward."""
    x = X[:, 0] if X.ndim > 2 else X
    h = _leaky_relu(x @ params["w0"] + params["b0"])
    h = _leaky_relu(h @ params["w1"] + params["b1"])
    z0 = h @ params["w2"] + params["b2"]
    return z0 @ params["theta0"]


if __name__ == "__main__":
    key = jax.random.PRNGKey(0)
    k_x, k_p = jax.random.split(key)

    X = jax.random.normal(k_x, (BATCH, SEQ, INPUT_FEATURES), jnp.float32)
    params = init_params(k_p)
    slab = pack_params(params)

    y_hat = grl_forward(X, slab)
    y_hat = jax.block_until_ready(y_hat)

    y_ref = grl_forward_ref(X, params)
    assert y_hat.shape == (BATCH, OUTPUT_FEATURES)
    # w2@theta0 pre-fusion and bias-lane folding only reassociate fp32 sums.
    assert jnp.allclose(y_hat, y_ref, atol=1e-4, rtol=1e-4)

    print("KERNEL_OK")
</pallas_src>

<mosaic_0001>
module attributes {stable_mosaic.version = 11 : i64} {
  func.func @grl_fused_kernel(%arg0: i32, %arg1: memref<256x80xf32, #tpu.memory_space<vmem>>, %arg2: memref<344x128xf32, #tpu.memory_space<vmem>>, %arg3: memref<256x4xf32, #tpu.memory_space<vmem>>) attributes {dimension_semantics = [#tpu.dimension_semantics<parallel>], iteration_bounds = array<i64: 1>, scalar_prefetch = 0 : i64, scratch_operands = 0 : i64, tpu.core_type = #tpu.core_type<tc>, window_params = [{transform_indices = @transform_0, window_bounds = array<i64: 256, 80>}, {pipeline_mode = #tpu.pipeline_mode<synchronous>, transform_indices = @transform_1, window_bounds = array<i64: 344, 128>}, {transform_indices = @transform_2, window_bounds = array<i64: 256, 4>}]} {
    %c0 = arith.constant 0 : index
    %c0_0 = arith.constant 0 : index
    %0 = vector.load %arg1[%c0, %c0_0] : memref<256x80xf32, #tpu.memory_space<vmem>>, vector<256x80xf32>
    %c0_1 = arith.constant 0 : index
    %c0_2 = arith.constant 0 : index
    %1 = vector.load %arg2[%c0_1, %c0_2] : memref<344x128xf32, #tpu.memory_space<vmem>>, vector<80x128xf32>
    %c80 = arith.constant 80 : index
    %c0_3 = arith.constant 0 : index
    %2 = vector.load %arg2[%c80, %c0_3] : memref<344x128xf32, #tpu.memory_space<vmem>>, vector<128x128xf32>
    %c208 = arith.constant 208 : index
    %c0_4 = arith.constant 0 : index
    %3 = vector.load %arg2[%c208, %c0_4] : memref<344x128xf32, #tpu.memory_space<vmem>>, vector<128x128xf32>
    %c336 = arith.constant 336 : index
    %c0_5 = arith.constant 0 : index
    %4 = vector.load %arg2[%c336, %c0_5] : memref<344x128xf32, #tpu.memory_space<vmem>>, vector<1x128xf32>
    %cst = arith.constant dense<0.000000e+00> : vector<256x128xf32>
    %5 = tpu.matmul %0, %1, %cst {dimension_numbers = #tpu.dot_dimension_numbers<[1], [0], [0], [1], [0, 0, 1, 1], [], []>} : vector<256x80xf32>, vector<80x128xf32>, vector<256x128xf32> -> vector<256x128xf32>
    %6 = vector.broadcast %4 : vector<1x128xf32> to vector<256x128xf32>
    %7 = arith.addf %5, %6 : vector<256x128xf32>
    %cst_6 = arith.constant 0.000000e+00 : f32
    %8 = vector.broadcast %cst_6 : f32 to vector<256x128xf32>
    %9 = arith.cmpf ogt, %7, %8 : vector<256x128xf32>
    %cst_7 = arith.constant 0.00999999977 : f32
    %10 = vector.broadcast %cst_7 : f32 to vector<256x128xf32>
    %11 = arith.mulf %10, %7 : vector<256x128xf32>
    %12 = arith.select %9, %7, %11 : vector<256x128xi1>, vector<256x128xf32>
    %cst_8 = arith.constant dense<0.000000e+00> : vector<256x128xf32>
    %13 = tpu.matmul %12, %2, %cst_8 {dimension_numbers = #tpu.dot_dimension_numbers<[1], [0], [0], [1], [0, 0, 1, 1], [], []>} : vector<256x128xf32>, vector<128x128xf32>, vector<256x128xf32> -> vector<256x128xf32>
    %cst_9 = arith.constant 0.000000e+00 : f32
    %14 = vector.broadcast %cst_9 : f32 to vector<256x128xf32>
    %15 = arith.cmpf ogt, %13, %14 : vector<256x128xf32>
    %cst_10 = arith.constant 0.00999999977 : f32
    %16 = vector.broadcast %cst_10 : f32 to vector<256x128xf32>
    %17 = arith.mulf %16, %13 : vector<256x128xf32>
    %18 = arith.select %15, %13, %17 : vector<256x128xi1>, vector<256x128xf32>
    %cst_11 = arith.constant dense<0.000000e+00> : vector<256x128xf32>
    %19 = tpu.matmul %18, %3, %cst_11 {dimension_numbers = #tpu.dot_dimension_numbers<[1], [0], [0], [1], [0, 0, 1, 1], [], []>} : vector<256x128xf32>, vector<128x128xf32>, vector<256x128xf32> -> vector<256x128xf32>
    %20 = vector.extract_strided_slice %19 {offsets = [0, 0], sizes = [256, 4], strides = [1, 1]} : vector<256x128xf32> to vector<256x4xf32>
    %c0_12 = arith.constant 0 : index
    %c0_13 = arith.constant 0 : index
    %21 = vector.load %arg3[%c0_12, %c0_13] : memref<256x4xf32, #tpu.memory_space<vmem>>, vector<256x4xf32>
    tpu.vector_store %arg3[%c0_12, %c0_13], %20 {strides = array<i32>} : memref<256x4xf32, #tpu.memory_space<vmem>>, vector<256x4xf32>,
    return
  }
  func.func @transform_0(%arg0: i32) -> (i32, i32) {
    %c0_i32 = arith.constant 0 : i32
    %c0_i32_0 = arith.constant 0 : i32
    return %arg0, %c0_i32 : i32, i32
  }
  func.func @transform_1(%arg0: i32) -> (i32, i32) {
    %c0_i32 = arith.constant 0 : i32
    %c0_i32_0 = arith.constant 0 : i32
    %c0_i32_1 = arith.constant 0 : i32
    return %c0_i32, %c0_i32_0 : i32, i32
  }
  func.func @transform_2(%arg0: i32) -> (i32, i32) {
    %c0_i32 = arith.constant 0 : i32
    %c0_i32_0 = arith.constant 0 : i32
    return %arg0, %c0_i32 : i32, i32
  }
}

</mosaic_0001>

<bundles_post_ra>
// kernel: grl_forward.1
= control target key start
LH: loop header
LB: loop body
LE: loop exit
PB: predicated region body
PF: predicated region fallthrough
CT: control target
= control target key end

     0   :  { %vm90_vm0 = vcmask 654336   ;;  %s2066_s1 = inlined_call_operand.vmem [shape: f32[344,128], index: 1, kind: input, shape index: {}]   ;;  %s2067_s0 = inlined_call_operand.vmem [shape: f32[256,80], index: 0, kind: input, shape index: {}]   ;;  %s2068_s2 = inlined_call_operand.vmem [shape: f32[256,4], index: 2, kind: output, shape index: {}]  }
   0x1   :  { %v43_v0 = vld [vmem:[%s2066_s1] sm:$0xff]  ;;  %v44_v1 = vld [vmem:[%s2066_s1 + $0x8] sm:$0xff]  ;;  %v45_v2 = vld [vmem:[%s2066_s1 + $0x10] sm:$0xff] }
   0x2   :  { %v1490_v3 = vpack.c.bf16 %v44_v1, %v43_v0  ;;  %v46_v4 = vld [vmem:[%s2066_s1 + $0x18] sm:$0xff]  ;;  %v47_v6 = vld [vmem:[%s2066_s1 + $0x20] sm:$0xff]  ;;  %v48_v7 = vld [vmem:[%s2066_s1 + $0x28] sm:$0xff] }
   0x3   :  { %v1494_v5 = vpack.c.bf16 %v46_v4, %v45_v2  ;;  %v11_v8 = vld [vmem:[%s2067_s0] sm:$0xff]  ;;  %v1498_v9 = vpack.c.bf16 %v48_v7, %v47_v6  ;;  %v49_v10 = vld [vmem:[%s2066_s1 + $0x30] sm:$0xff]  ;;  %v50_v11 = vld [vmem:[%s2066_s1 + $0x38] sm:$0xff] }
   0x4   :  { %1491 = vmatprep.subr.bf16.mxu0 %v1490_v3  ;;  %1574 = vmatprep.subr.bf16.mxu1 %v1490_v3  ;;  %v27_v12 = vld [vmem:[%s2067_s0 + $0x80] sm:$0xff]  ;;  %v1502_v13 = vpack.c.bf16 %v50_v11, %v49_v10  ;;  %v52_v15 = vld [vmem:[%s2066_s1 + $0x48] sm:$0xff]  ;;  %v53_v17 = vld [vmem:[%s2066_s1 + $0x50] sm:$0xff] }
   0x5   :  { %1493 = vmatpush3.bf16.msra.mxu0 %v1490_v3  ;;  %1282 = vmatprep.mubr.msk.f32.mxu0 %vm90_vm0, %v11_v8  ;;  %v51_v14 = vld [vmem:[%s2066_s1 + $0x40] sm:$0xff]  ;;  %v54_v18 = vld [vmem:[%s2066_s1 + $0x58] sm:$0xff]  ;;  %v56_v21 = vld [vmem:[%s2066_s1 + $0x68] sm:$0xff] }
   0x6   :  { %1495 = vmatprep.subr.bf16.mxu0 %v1494_v5  ;;  %1579 = vmatpush3.bf16.msra.mxu1 %v1490_v3  ;;  %v1506_v16 = vpack.c.bf16 %v52_v15, %v51_v14  ;;  %v1510_v19 = vpack.c.bf16 %v54_v18, %v53_v17  ;;  %v55_v20 = vld [vmem:[%s2066_s1 + $0x60] sm:$0xff]  ;;  %v12_v22 = vld [vmem:[%s2067_s0 + $0x8] sm:$0xff]  ;;  %v13_v23 = vld [vmem:[%s2067_s0 + $0x10] sm:$0xff] }
   0x7   :  { %1575 = vmatprep.subr.bf16.mxu1 %v1494_v5  ;;  %1306 = vmatprep.mubr.msk.f32.mxu1 %vm90_vm0, %v27_v12  ;;  %v28_v24 = vld [vmem:[%s2067_s0 + $0x88] sm:$0xff]  ;;  %v29_v25 = vld [vmem:[%s2067_s0 + $0x90] sm:$0xff]  ;;  %v1514_v26 = vpack.c.bf16 %v56_v21, %v55_v20  ;;  %v58_v28 = vld [vmem:[%s2066_s1 + $0x78] sm:$0xff] }
   0x8   :  { %v57_v27 = vld [vmem:[%s2066_s1 + $0x70] sm:$0xff]  ;;  %v14_v29 = vld [vmem:[%s2067_s0 + $0x18] sm:$0xff]  ;;  %v15_v30 = vld [vmem:[%s2067_s0 + $0x20] sm:$0xff] }
   0x9   :  { %1497 = vmatpush3.bf16.msra.mxu0 %v1494_v5  ;;  %v30_v31 = vld [vmem:[%s2067_s0 + $0x98] sm:$0xff]  ;;  %v31_v32 = vld [vmem:[%s2067_s0 + $0xa0] sm:$0xff]  ;;  %v1518_v33 = vpack.c.bf16 %v58_v28, %v57_v27  ;;  %v60_v35 = vld [vmem:[%s2066_s1 + $0x88] sm:$0xff] }
   0xa   :  { %1499 = vmatprep.subr.bf16.mxu0 %v1498_v9  ;;  %1580 = vmatpush3.bf16.msra.mxu1 %v1494_v5  ;;  %v59_v34 = vld [vmem:[%s2066_s1 + $0x80] sm:$0xff]  ;;  %v16_v36 = vld [vmem:[%s2067_s0 + $0x28] sm:$0xff]  ;;  %v17_v37 = vld [vmem:[%s2067_s0 + $0x30] sm:$0xff] }
   0xb   :  { %1576 = vmatprep.subr.bf16.mxu1 %v1498_v9  ;;  %v32_v38 = vld [vmem:[%s2067_s0 + $0xa8] sm:$0xff]  ;;  %v33_v39 = vld [vmem:[%s2067_s0 + $0xb0] sm:$0xff]  ;;  %v1522_v40 = vpack.c.bf16 %v60_v35, %v59_v34  ;;  %v62_v42 = vld [vmem:[%s2066_s1 + $0x98] sm:$0xff] }
   0xc   :  { %v61_v41 = vld [vmem:[%s2066_s1 + $0x90] sm:$0xff]  ;;  %v18_v43 = vld [vmem:[%s2067_s0 + $0x38] sm:$0xff]  ;;  %v19_v44 = vld [vmem:[%s2067_s0 + $0x40] sm:$0xff] }
   0xd   :  { %1501 = vmatpush3.bf16.msra.mxu0 %v1498_v9  ;;  %v34_v45 = vld [vmem:[%s2067_s0 + $0xb8] sm:$0xff]  ;;  %v35_v46 = vld [vmem:[%s2067_s0 + $0xc0] sm:$0xff]  ;;  %v1526_v47 = vpack.c.bf16 %v62_v42, %v61_v41  ;;  %v64_v49 = vld [vmem:[%s2066_s1 + $0xa8] sm:$0xff] }
   0xe   :  { %1503 = vmatprep.subr.bf16.mxu0 %v1502_v13  ;;  %1581 = vmatpush3.bf16.msra.mxu1 %v1498_v9  ;;  %v63_v48 = vld [vmem:[%s2066_s1 + $0xa0] sm:$0xff]  ;;  %v20_v50 = vld [vmem:[%s2067_s0 + $0x48] sm:$0xff]  ;;  %v21_v51 = vld [vmem:[%s2067_s0 + $0x50] sm:$0xff] }
   0xf   :  { %1577 = vmatprep.subr.bf16.mxu1 %v1502_v13  ;;  %v36_v52 = vld [vmem:[%s2067_s0 + $0xc8] sm:$0xff]  ;;  %v37_v53 = vld [vmem:[%s2067_s0 + $0xd0] sm:$0xff]  ;;  %v1530_v54 = vpack.c.bf16 %v64_v49, %v63_v48  ;;  %v66_v56 = vld [vmem:[%s2066_s1 + $0xb8] sm:$0xff] }
  0x10   :  { %v65_v55 = vld [vmem:[%s2066_s1 + $0xb0] sm:$0xff]  ;;  %v22_v57 = vld [vmem:[%s2067_s0 + $0x58] sm:$0xff]  ;;  %v23_v58 = vld [vmem:[%s2067_s0 + $0x60] sm:$0xff] }
  0x11   :  { %1505 = vmatpush3.bf16.msra.mxu0 %v1502_v13  ;;  %v38_v59 = vld [vmem:[%s2067_s0 + $0xd8] sm:$0xff]  ;;  %v39_v60 = vld [vmem:[%s2067_s0 + $0xe0] sm:$0xff]  ;;  %v1534_v61 = vpack.c.bf16 %v66_v56, %v65_v55  ;;  %v24_v62 = vld [vmem:[%s2067_s0 + $0x68] sm:$0xff] }
  0x12   :  { %1507 = vmatprep.subr.bf16.mxu0 %v1506_v16  ;;  %1582 = vmatpush3.bf16.msra.mxu1 %v1502_v13  ;;  %v25_v63 = vld [vmem:[%s2067_s0 + $0x70] sm:$0xff]  ;;  %v40_v0 = vld [vmem:[%s2067_s0 + $0xe8] sm:$0xff]  ;;  %v26_v2 = vld [vmem:[%s2067_s0 + $0x78] sm:$0xff] }
  0x13   :  { %1578 = vmatprep.subr.bf16.mxu1 %v1506_v16  ;;  %v41_v1 = vld [vmem:[%s2067_s0 + $0xf0] sm:$0xff]  ;;  %v42_v3 = vld [vmem:[%s2067_s0 + $0xf8] sm:$0xff]  ;;  %v67_v4 = vld [vmem:[%s2066_s1 + $0xc0] sm:$0xff] }
  0x14   :  { %v68_v5 = vld [vmem:[%s2066_s1 + $0xc8] sm:$0xff]  ;;  %v69_v7 = vld [vmem:[%s2066_s1 + $0xd0] sm:$0xff]  ;;  %v70_v8 = vld [vmem:[%s2066_s1 + $0xd8] sm:$0xff] }
  0x15   :  { %1509 = vmatpush3.bf16.msra.mxu0 %v1506_v16  ;;  %v1538_v6 = vpack.c.bf16 %v68_v5, %v67_v4  ;;  %v71_v9 = vld [vmem:[%s2066_s1 + $0xe0] sm:$0xff]  ;;  %v1542_v10 = vpack.c.bf16 %v70_v8, %v69_v7  ;;  %v72_v11 = vld [vmem:[%s2066_s1 + $0xe8] sm:$0xff]  ;;  %v73_v13 = vld [vmem:[%s2066_s1 + $0xf0] sm:$0xff] }
  0x16   :  { %1583 = vmatpush3.bf16.msra.mxu1 %v1506_v16  ;;  %v1546_v12 = vpack.c.bf16 %v72_v11, %v71_v9  ;;  %v74_v14 = vld [vmem:[%s2066_s1 + $0xf8] sm:$0xff]  ;;  %v75_v16 = vld [vmem:[%s2066_s1 + $0x100] sm:$0xff]  ;;  %v76_v17 = vld [vmem:[%s2066_s1 + $0x108] sm:$0xff] }
  0x17   :  { %1511 = vmatprep.subr.bf16.mxu1 %v1510_v19  ;;  %1543 = vmatprep.subr.bf16.mxu0 %v1542_v10  ;;  %v1550_v15 = vpack.c.bf16 %v74_v14, %v73_v13  ;;  %v1554_v18 = vpack.c.bf16 %v76_v17, %v75_v16  ;;  %v78_v20 = vld [vmem:[%s2066_s1 + $0x118] sm:$0xff]  ;;  %v1850_v28 = vld [vmem:[%s2066_s1 + $0x150] ss:$0 sm:$0xff] }
  0x18   :  { %1283 = vmatmul.mubr.msk.f32.vlgmr.msra.gmra.mrb[0].mxu0 %vm90_vm0, %v12_v22  ;;  %v79_v22 = vld [vmem:[%s2066_s1 + $0x120] sm:$0xff] }
  0x19   :  { %1285 = vmatprep.mubr.msk.f32.mxu0 %vm90_vm0, %v13_v23  ;;  %1307 = vmatmul.mubr.msk.f32.vlgmr.msra.gmra.mrb[0].mxu1 %vm90_vm0, %v28_v24  ;;  %v80_v23 = vld [vmem:[%s2066_s1 + $0x128] sm:$0xff] }
  0x1a   :  { %1309 = vmatprep.mubr.msk.f32.mxu1 %vm90_vm0, %v29_v25  ;;  %1513 = vmatpush3.bf16.msra.mxu1 %v1510_v19  ;;  %v77_v19 = vld [vmem:[%s2066_s1 + $0x110] sm:$0xff]  ;;  %v1562_v24 = vpack.c.bf16 %v80_v23, %v79_v22 }
  0x1b   :  { %1515 = vmatprep.subr.bf16.mxu1 %v1514_v26  ;;  %1545 = vmatpush3.bf16.msra.mxu0 %v1542_v10  ;;  %v1558_v21 = vpack.c.bf16 %v78_v20, %v77_v19  ;;  %v81_v25 = vld [vmem:[%s2066_s1 + $0x130] sm:$0xff] }
  0x1c   :  { %1286 = vmatmul.mubr.msk.f32.gmra.mrb[2].mxu0 %vm90_vm0, %v14_v29  ;;  %1547 = vmatprep.subr.bf16.mxu0 %v1546_v12 }
  0x1d   :  { %1288 = vmatprep.mubr.msk.f32.mxu0 %vm90_vm0, %v15_v30  ;;  %1310 = vmatmul.mubr.msk.f32.gmra.mrb[2].mxu1 %vm90_vm0, %v30_v31 }
  0x1e   :  { %1312 = vmatprep.mubr.msk.f32.mxu1 %vm90_vm0, %v31_v32  ;;  %1517 = vmatpush3.bf16.msra.mxu1 %v1514_v26  ;;  %v82_v26 = vld [vmem:[%s2066_s1 + $0x138] sm:$0xff] }
  0x1f   :  { %1519 = vmatprep.subr.bf16.mxu1 %v1518_v33  ;;  %1549 = vmatpush3.bf16.msra.mxu0 %v1546_v12  ;;  %v1566_v27 = vpack.c.bf16 %v82_v26, %v81_v25 }
  0x20   :  { %1289 = vmatmul.mubr.msk.f32.gmra.mrb[4].mxu0 %vm90_vm0, %v16_v36  ;;  %1551 = vmatprep.subr.bf16.mxu0 %v1550_v15 }
  0x21   :  { %1291 = vmatprep.mubr.msk.f32.mxu0 %vm90_vm0, %v17_v37  ;;  %1313 = vmatmul.mubr.msk.f32.gmra.mrb[4].mxu1 %vm90_vm0, %v32_v38 }
  0x22   :  { %1315 = vmatprep.mubr.msk.f32.mxu1 %vm90_vm0, %v33_v39  ;;  %1521 = vmatpush3.bf16.msra.mxu1 %v1518_v33 }
  0x23   :  { %1523 = vmatprep.subr.bf16.mxu1 %v1522_v40  ;;  %1553 = vmatpush3.bf16.msra.mxu0 %v1550_v15 }
  0x24   :  { %1292 = vmatmul.mubr.msk.f32.gmra.mrb[6].mxu0 %vm90_vm0, %v18_v43  ;;  %1555 = vmatprep.subr.bf16.mxu0 %v1554_v18 }
  0x25   :  { %1294 = vmatprep.mubr.msk.f32.mxu0 %vm90_vm0, %v19_v44  ;;  %1316 = vmatmul.mubr.msk.f32.gmra.mrb[6].mxu1 %vm90_vm0, %v34_v45 }
  0x26   :  { %1318 = vmatprep.mubr.msk.f32.mxu1 %vm90_vm0, %v35_v46  ;;  %1525 = vmatpush3.bf16.msra.mxu1 %v1522_v40 }
  0x27   :  { %1527 = vmatprep.subr.bf16.mxu1 %v1526_v47  ;;  %1557 = vmatpush3.bf16.msra.mxu0 %v1554_v18 }
  0x28   :  { %1295 = vmatmul.mubr.msk.f32.gmra.mrb[8].mxu0 %vm90_vm0, %v20_v50  ;;  %1559 = vmatprep.subr.bf16.mxu0 %v1558_v21 }
  0x29   :  { %1297 = vmatprep.mubr.msk.f32.mxu0 %vm90_vm0, %v21_v51  ;;  %1319 = vmatmul.mubr.msk.f32.gmra.mrb[8].mxu1 %vm90_vm0, %v36_v52 }
  0x2a   :  { %1321 = vmatprep.mubr.msk.f32.mxu1 %vm90_vm0, %v37_v53  ;;  %1529 = vmatpush3.bf16.msra.mxu1 %v1526_v47 }
  0x2b   :  { %1531 = vmatprep.subr.bf16.mxu1 %v1530_v54  ;;  %1561 = vmatpush3.bf16.msra.mxu0 %v1558_v21 }
  0x2c   :  { %1298 = vmatmul.mubr.msk.f32.gmra.mrb[10].mxu0 %vm90_vm0, %v22_v57  ;;  %1563 = vmatprep.subr.bf16.mxu0 %v1562_v24 }
  0x2d   :  { %1300 = vmatprep.mubr.msk.f32.mxu0 %vm90_vm0, %v23_v58  ;;  %1322 = vmatmul.mubr.msk.f32.gmra.mrb[10].mxu1 %vm90_vm0, %v38_v59 }
  0x2e   :  { %1324 = vmatprep.mubr.msk.f32.mxu1 %vm90_vm0, %v39_v60  ;;  %1533 = vmatpush3.bf16.msra.mxu1 %v1530_v54 }
  0x2f   :  { %1535 = vmatprep.subr.bf16.mxu1 %v1534_v61  ;;  %1565 = vmatpush3.bf16.msra.mxu0 %v1562_v24 }
  0x30   :  { %1301 = vmatmul.mubr.msk.f32.gmra.mrb[12].mxu0 %vm90_vm0, %v24_v62  ;;  %1567 = vmatprep.subr.bf16.mxu0 %v1566_v27 }
  0x31   :  { %1303 = vmatprep.mubr.msk.f32.mxu0 %vm90_vm0, %v25_v63  ;;  %1325 = vmatmul.mubr.msk.f32.gmra.mrb[12].mxu1 %vm90_vm0, %v40_v0 }
  0x32   :  { %1327 = vmatprep.mubr.msk.f32.mxu1 %vm90_vm0, %v41_v1  ;;  %1537 = vmatpush3.bf16.msra.mxu1 %v1534_v61 }
  0x33   :  { %1539 = vmatprep.subr.bf16.mxu1 %v1538_v6  ;;  %1569 = vmatpush3.bf16.msra.mxu0 %v1566_v27 }
  0x34   :  { %1304 = vmatmul.mubr.msk.f32.gmra.mrb[14].mxu0 %vm90_vm0, %v26_v2 }
  0x35   :  { %1328 = vmatmul.mubr.msk.f32.gmra.mrb[14].mxu1 %vm90_vm0, %v42_v3 }
  0x36   :  { %1541 = vmatpush3.bf16.msra.mxu1 %v1538_v6 }
  0xeb   :  { %v1284_v29 = vpop.f32.mrb[0].mxu0 }
  0xec   :  { %v259_v30 = vadd.f32 %v1284_v29, %v1850_v28  ;;  %v253_v31 = vpop.f32.mrb[1].mxu0  ;;  %v1853_v32 = vpop.f32.mrb[0].mxu1 }
  0xed   :  { %v254_v33 = vadd.f32 %v1850_v28, %v253_v31  ;;  %v1856_v34 = vpop.f32.mrb[1].mxu1 }
  0xee   :  { %v445_v35 = vmul.f32 0.01, %v259_v30  ;;  %vm413_vm1 = vcmp.gt.f32.partialorder %v259_v30, 0.0 }
  0xef   :  { %v444_v36 = vmul.f32 0.01, %v254_v33  ;;  %v1287_v37 = vpop.f32.mrb[2].mxu0  ;;  %vm412_vm2 = vcmp.gt.f32.partialorder %v254_v33, 0.0 }
  0xf0   :  { %v269_v38 = vadd.f32 %v1287_v37, %v1850_v28  ;;  %v263_v39 = vpop.f32.mrb[3].mxu0  ;;  %v1859_v40 = vpop.f32.mrb[2].mxu1  ;;  %v477_v44 = vsel %vm413_vm1, %v259_v30, %v445_v35  ;;  %v334_v30 = vadd.f32 %v1850_v28, %v1856_v34 }
  0xf1   :  { %v264_v41 = vadd.f32 %v1850_v28, %v263_v39  ;;  %v476_v42 = vsel %vm412_vm2, %v254_v33, %v444_v36  ;;  %v1862_v43 = vpop.f32.mrb[3].mxu1 }
  0xf2   :  { %v447_v45 = vmul.f32 0.01, %v269_v38  ;;  %1362 = vmatprep.mubr.f32.mxu1 %v476_v42  ;;  %vm415_vm4 = vcmp.gt.f32.partialorder %v269_v38, 0.0  ;;  %v344_v34 = vadd.f32 %v1850_v28, %v1862_v43  ;;  %vm428_vm15 = vcmp.gt.f32.partialorder %v334_v30, 0.0 }
  0xf3   :  { %v446_v46 = vmul.f32 0.01, %v264_v41  ;;  %v1290_v47 = vpop.f32.mrb[4].mxu0  ;;  %1363 = vmatmul.mubr.f32.vlgmr.msra.gmra.mrb[16].mxu1 %v477_v44  ;;  %vm414_vm3 = vcmp.gt.f32.partialorder %v264_v41, 0.0  ;;  %v460_v44 = vmul.f32 0.01, %v334_v30 }
  0xf4   :  { %v279_v48 = vadd.f32 %v1290_v47, %v1850_v28  ;;  %v273_v49 = vpop.f32.mrb[5].mxu0  ;;  %v1865_v50 = vpop.f32.mrb[4].mxu1  ;;  %v479_v55 = vsel %vm415_vm4, %v269_v38, %v447_v45  ;;  %vm430_vm2 = vcmp.gt.f32.partialorder %v344_v34, 0.0 }
  0xf5   :  { %v274_v51 = vadd.f32 %v1850_v28, %v273_v49  ;;  %v478_v52 = vsel %vm414_vm3, %v264_v41, %v446_v46  ;;  %v1868_v53 = vpop.f32.mrb[5].mxu1 }
  0xf6   :  { %v449_v54 = vmul.f32 0.01, %v279_v48  ;;  %1365 = vmatprep.mubr.f32.mxu1 %v478_v52  ;;  %vm417_vm6 = vcmp.gt.f32.partialorder %v279_v48, 0.0  ;;  %v462_v52 = vmul.f32 0.01, %v344_v34 }
  0xf7   :  { %v448_v56 = vmul.f32 0.01, %v274_v51  ;;  %v1293_v57 = vpop.f32.mrb[6].mxu0  ;;  %1366 = vmatmul.mubr.f32.gmra.mrb[18].mxu1 %v479_v55  ;;  %vm416_vm5 = vcmp.gt.f32.partialorder %v274_v51, 0.0  ;;  %v492_v55 = vsel %vm428_vm15, %v334_v30, %v460_v44 }
  0xf8   :  { %v289_v58 = vadd.f32 %v1293_v57, %v1850_v28  ;;  %v283_v59 = vpop.f32.mrb[7].mxu0  ;;  %v1871_v60 = vpop.f32.mrb[6].mxu1  ;;  %v481_v1 = vsel %vm417_vm6, %v279_v48, %v449_v54  ;;  %v339_v48 = vadd.f32 %v1853_v32, %v1850_v28  ;;  %v349_v57 = vadd.f32 %v1859_v40, %v1850_v28 }
  0xf9   :  { %v284_v61 = vadd.f32 %v1850_v28, %v283_v59  ;;  %v480_v62 = vsel %vm416_vm5, %v274_v51, %v448_v56  ;;  %v1874_v63 = vpop.f32.mrb[7].mxu1  ;;  %v354_v56 = vadd.f32 %v1850_v28, %v1868_v53  ;;  %v494_v59 = vsel %vm430_vm2, %v344_v34, %v462_v52 }
  0xfa   :  { %v451_v0 = vmul.f32 0.01, %v289_v58  ;;  %1368 = vmatprep.mubr.f32.mxu1 %v480_v62  ;;  %vm419_vm8 = vcmp.gt.f32.partialorder %v289_v58, 0.0  ;;  %v461_v43 = vmul.f32 0.01, %v339_v48  ;;  %vm429_vm3 = vcmp.gt.f32.partialorder %v339_v48, 0.0 }
  0xfb   :  { %v450_v2 = vmul.f32 0.01, %v284_v61  ;;  %v1296_v3 = vpop.f32.mrb[8].mxu0  ;;  %1369 = vmatmul.mubr.f32.gmra.mrb[20].mxu1 %v481_v1  ;;  %vm418_vm7 = vcmp.gt.f32.partialorder %v284_v61, 0.0  ;;  %v464_v32 = vmul.f32 0.01, %v354_v56 }
  0xfc   :  { %v299_v4 = vadd.f32 %v1296_v3, %v1850_v28  ;;  %v293_v5 = vpop.f32.mrb[9].mxu0  ;;  %v1877_v6 = vpop.f32.mrb[8].mxu1  ;;  %v483_v11 = vsel %vm419_vm8, %v289_v58, %v451_v0  ;;  %v463_v62 = vmul.f32 0.01, %v349_v57  ;;  %v359_v0 = vadd.f32 %v1865_v50, %v1850_v28 }
  0xfd   :  { %v294_v7 = vadd.f32 %v1850_v28, %v293_v5  ;;  %v482_v8 = vsel %vm418_vm7, %v284_v61, %v450_v2  ;;  %v1880_v9 = vpop.f32.mrb[9].mxu1  ;;  %v364_v61 = vadd.f32 %v1850_v28, %v1874_v63  ;;  %v493_v53 = vsel %vm429_vm3, %v339_v48, %v461_v43 }
  0xfe   :  { %v453_v10 = vmul.f32 0.01, %v299_v4  ;;  %1371 = vmatprep.mubr.f32.mxu1 %v482_v8  ;;  %vm421_vm10 = vcmp.gt.f32.partialorder %v299_v4, 0.0  ;;  %vm432_vm4 = vcmp.gt.f32.partialorder %v354_v56, 0.0  ;;  %vm431_vm5 = vcmp.gt.f32.partialorder %v349_v57, 0.0 }
  0xff   :  { %v452_v12 = vmul.f32 0.01, %v294_v7  ;;  %v1299_v13 = vpop.f32.mrb[10].mxu0  ;;  %1372 = vmatmul.mubr.f32.gmra.mrb[22].mxu1 %v483_v11  ;;  %vm420_vm9 = vcmp.gt.f32.partialorder %v294_v7, 0.0  ;;  %v466_v40 = vmul.f32 0.01, %v364_v61  ;;  %v496_v1 = vsel %vm432_vm4, %v354_v56, %v464_v32 }
 0x100   :  { %v309_v14 = vadd.f32 %v1299_v13, %v1850_v28  ;;  %v303_v15 = vpop.f32.mrb[11].mxu0  ;;  %v1883_v16 = vpop.f32.mrb[10].mxu1  ;;  %v485_v21 = vsel %vm421_vm10, %v299_v4, %v453_v10  ;;  %v374_v2 = vadd.f32 %v1850_v28, %v1880_v9  ;;  %v465_v3 = vmul.f32 0.01, %v359_v0 }
 0x101   :  { %v304_v17 = vadd.f32 %v1850_v28, %v303_v15  ;;  %v484_v18 = vsel %vm420_vm9, %v294_v7, %v452_v12  ;;  %v1886_v19 = vpop.f32.mrb[11].mxu1  ;;  %v369_v4 = vadd.f32 %v1871_v60, %v1850_v28  ;;  %v495_v5 = vsel %vm431_vm5, %v349_v57, %v463_v62 }
 0x102   :  { %v455_v20 = vmul.f32 0.01, %v309_v14  ;;  %1374 = vmatprep.mubr.f32.mxu1 %v484_v18  ;;  %vm423_vm12 = vcmp.gt.f32.partialorder %v309_v14, 0.0  ;;  %vm434_vm6 = vcmp.gt.f32.partialorder %v364_v61, 0.0  ;;  %vm433_vm7 = vcmp.gt.f32.partialorder %v359_v0, 0.0 }
 0x103   :  { %v454_v22 = vmul.f32 0.01, %v304_v17  ;;  %v1302_v23 = vpop.f32.mrb[12].mxu0  ;;  %1375 = vmatmul.mubr.f32.gmra.mrb[24].mxu1 %v485_v21  ;;  %vm422_vm11 = vcmp.gt.f32.partialorder %v304_v17, 0.0  ;;  %v468_v50 = vmul.f32 0.01, %v374_v2  ;;  %v498_v63 = vsel %vm434_vm6, %v364_v61, %v466_v40 }
 0x104   :  { %v319_v24 = vadd.f32 %v1302_v23, %v1850_v28  ;;  %v313_v25 = vpop.f32.mrb[13].mxu0  ;;  %v1889_v26 = vpop.f32.mrb[12].mxu1  ;;  %v487_v35 = vsel %vm423_vm12, %v309_v14, %v455_v20  ;;  %v384_v7 = vadd.f32 %v1850_v28, %v1886_v19  ;;  %v467_v8 = vmul.f32 0.01, %v369_v4 }
 0x105   :  { %v314_v27 = vadd.f32 %v1850_v28, %v313_v25  ;;  %v486_v29 = vsel %vm422_vm11, %v304_v17, %v454_v22  ;;  %v1894_v31 = vpop.f32.mrb[13].mxu1  ;;  %v379_v10 = vadd.f32 %v1877_v6, %v1850_v28  ;;  %v497_v11 = vsel %vm433_vm7, %v359_v0, %v465_v3 }
 0x106   :  { %v457_v33 = vmul.f32 0.01, %v319_v24  ;;  %1377 = vmatprep.mubr.f32.mxu1 %v486_v29  ;;  %vm425_vm14 = vcmp.gt.f32.partialorder %v319_v24, 0.0  ;;  %vm436_vm8 = vcmp.gt.f32.partialorder %v374_v2, 0.0  ;;  %vm435_vm9 = vcmp.gt.f32.partialorder %v369_v4, 0.0 }
 0x107   :  { %v456_v36 = vmul.f32 0.01, %v314_v27  ;;  %v1305_v37 = vpop.f32.mrb[14].mxu0  ;;  %1378 = vmatmul.mubr.f32.gmra.mrb[26].mxu1 %v487_v35  ;;  %vm424_vm13 = vcmp.gt.f32.partialorder %v314_v27, 0.0  ;;  %v470_v60 = vmul.f32 0.01, %v384_v7  ;;  %v500_v9 = vsel %vm436_vm8, %v374_v2, %v468_v50 }
 0x108   :  { %v329_v38 = vadd.f32 %v1305_v37, %v1850_v28  ;;  %v323_v39 = vpop.f32.mrb[15].mxu0  ;;  %v1897_v41 = vpop.f32.mrb[14].mxu1  ;;  %v489_v49 = vsel %vm425_vm14, %v319_v24, %v457_v33  ;;  %v394_v12 = vadd.f32 %v1850_v28, %v1894_v31  ;;  %v469_v13 = vmul.f32 0.01, %v379_v10  ;;  %v83_v31 = vld [vmem:[%s2066_s1 + $0x140] sm:$0xff] }
 0x109   :  { %v324_v42 = vadd.f32 %v1850_v28, %v323_v39  ;;  %v488_v45 = vsel %vm424_vm13, %v314_v27, %v456_v36  ;;  %v1902_v46 = vpop.f32.mrb[15].mxu1  ;;  %v389_v14 = vadd.f32 %v1883_v16, %v1850_v28  ;;  %v499_v15 = vsel %vm435_vm9, %v369_v4, %v467_v8 }
 0x10a   :  { %v459_v47 = vmul.f32 0.01, %v329_v38  ;;  %1380 = vmatprep.mubr.f32.mxu1 %v488_v45  ;;  %vm427_vm1 = vcmp.gt.f32.partialorder %v329_v38, 0.0  ;;  %vm438_vm10 = vcmp.gt.f32.partialorder %v384_v7, 0.0  ;;  %vm437_vm11 = vcmp.gt.f32.partialorder %v379_v10, 0.0 }
 0x10b   :  { %v458_v51 = vmul.f32 0.01, %v324_v42  ;;  %1381 = vmatmul.mubr.f32.gmra.mrb[28].mxu1 %v489_v49  ;;  %vm426_vm0 = vcmp.gt.f32.partialorder %v324_v42, 0.0  ;;  %v472_v6 = vmul.f32 0.01, %v394_v12  ;;  %v502_v17 = vsel %vm438_vm10, %v384_v7, %v470_v60 }
 0x10c   :  { %v491_v58 = vsel %vm427_vm1, %v329_v38, %v459_v47  ;;  %v404_v18 = vadd.f32 %v1850_v28, %v1902_v46  ;;  %v471_v19 = vmul.f32 0.01, %v389_v14  ;;  %v399_v20 = vadd.f32 %v1889_v26, %v1850_v28 }
 0x10d   :  { %v490_v54 = vsel %vm426_vm0, %v324_v42, %v458_v51  ;;  %v501_v21 = vsel %vm437_vm11, %v379_v10, %v469_v13  ;;  %vm440_vm12 = vcmp.gt.f32.partialorder %v394_v12, 0.0  ;;  %vm439_vm13 = vcmp.gt.f32.partialorder %v389_v14, 0.0 }
 0x10e   :  { %1383 = vmatprep.mubr.f32.mxu1 %v490_v54  ;;  %v474_v16 = vmul.f32 0.01, %v404_v18  ;;  %v504_v22 = vsel %vm440_vm12, %v394_v12, %v472_v6  ;;  %v473_v23 = vmul.f32 0.01, %v399_v20  ;;  %v409_v24 = vadd.f32 %v1897_v41, %v1850_v28  ;;  %v84_v28 = vld [vmem:[%s2066_s1 + $0x148] sm:$0xff] }
 0x10f   :  { %1384 = vmatmul.mubr.f32.gmra.mrb[30].mxu1 %v491_v58  ;;  %v503_v25 = vsel %vm439_vm13, %v389_v14, %v471_v19  ;;  %vm442_vm14 = vcmp.gt.f32.partialorder %v404_v18, 0.0  ;;  %vm441_vm15 = vcmp.gt.f32.partialorder %v399_v20, 0.0  ;;  %v1570_v33 = vpack.c.bf16 %v84_v28, %v83_v31 }
 0x110   :  { %1386 = vmatprep.mubr.f32.mxu1 %v492_v55  ;;  %v506_v27 = vsel %vm442_vm14, %v404_v18, %v474_v16  ;;  %v475_v29 = vmul.f32 0.01, %v409_v24  ;;  %v505_v30 = vsel %vm441_vm15, %v399_v20, %v473_v23  ;;  %vm443_vm0 = vcmp.gt.f32.partialorder %v409_v24, 0.0 }
 0x111   :  { %1571 = vmatprep.subr.bf16.mxu0 %v1570_v33 }
 0x112   :  { %v507_v26 = vsel %vm443_vm0, %v409_v24, %v475_v29  ;;  %1573 = vmatpush3.bf16.msra.mxu0 %v1570_v33 }
 0x113   :  { %1387 = vmatmul.mubr.f32.gmra.mrb[32].mxu1 %v493_v53 }
 0x114   :  { %1389 = vmatprep.mubr.f32.mxu1 %v494_v59 }
 0x117   :  { %1390 = vmatmul.mubr.f32.gmra.mrb[34].mxu1 %v495_v5 }
 0x118   :  { %1392 = vmatprep.mubr.f32.mxu1 %v496_v1 }
 0x11b   :  { %1393 = vmatmul.mubr.f32.gmra.mrb[36].mxu1 %v497_v11 }
 0x11c   :  { %1395 = vmatprep.mubr.f32.mxu1 %v498_v63 }
 0x11f   :  { %1396 = vmatmul.mubr.f32.gmra.mrb[38].mxu1 %v499_v15 }
 0x120   :  { %1398 = vmatprep.mubr.f32.mxu1 %v500_v9 }
 0x123   :  { %1399 = vmatmul.mubr.f32.gmra.mrb[40].mxu1 %v501_v21 }
 0x124   :  { %1401 = vmatprep.mubr.f32.mxu1 %v502_v17 }
 0x127   :  { %1402 = vmatmul.mubr.f32.gmra.mrb[42].mxu1 %v503_v25 }
 0x128   :  { %1404 = vmatprep.mubr.f32.mxu1 %v504_v22 }
 0x12b   :  { %1405 = vmatmul.mubr.f32.gmra.mrb[44].mxu1 %v505_v30 }
 0x12c   :  { %1407 = vmatprep.mubr.f32.mxu1 %v506_v27 }
 0x12f   :  { %1408 = vmatmul.mubr.f32.gmra.mrb[46].mxu1 %v507_v26 }
 0x1c6   :  { %v1364_v35 = vpop.f32.mrb[16].mxu1 }
 0x1c7   :  { %v766_v36 = vmul.f32 0.01, %v1364_v35  ;;  %v574_v37 = vpop.f32.mrb[17].mxu1  ;;  %vm734_vm1 = vcmp.gt.f32.partialorder %v1364_v35, 0.0 }
 0x1c8   :  { %vm733_vm2 = vcmp.gt.f32.partialorder %v574_v37, 0.0  ;;  %v765_v38 = vmul.f32 0.01, %v574_v37 }
 0x1c9   :  { %v798_v42 = vsel %vm734_vm1, %v1364_v35, %v766_v36 }
 0x1ca   :  { %v1367_v39 = vpop.f32.mrb[18].mxu1  ;;  %v797_v41 = vsel %vm733_vm2, %v574_v37, %v765_v38 }
 0x1cb   :  { %v768_v44 = vmul.f32 0.01, %v1367_v39  ;;  %v584_v45 = vpop.f32.mrb[19].mxu1  ;;  %1442 = vmatprep.mubr.f32.mxu0 %v797_v41  ;;  %vm736_vm3 = vcmp.gt.f32.partialorder %v1367_v39, 0.0 }
 0x1cc   :  { %vm735_vm4 = vcmp.gt.f32.partialorder %v584_v45, 0.0  ;;  %v767_v34 = vmul.f32 0.01, %v584_v45  ;;  %1443 = vmatmul.mubr.f32.vlgmr.msra.gmra.mrb[16].mxu0 %v798_v42 }
 0x1cd   :  { %v800_v51 = vsel %vm736_vm3, %v1367_v39, %v768_v44 }
 0x1ce   :  { %v1370_v46 = vpop.f32.mrb[20].mxu1  ;;  %v799_v47 = vsel %vm735_vm4, %v584_v45, %v767_v34 }
 0x1cf   :  { %v770_v48 = vmul.f32 0.01, %v1370_v46  ;;  %v594_v49 = vpop.f32.mrb[21].mxu1  ;;  %1445 = vmatprep.mubr.f32.mxu0 %v799_v47  ;;  %vm738_vm5 = vcmp.gt.f32.partialorder %v1370_v46, 0.0 }
 0x1d0   :  { %vm737_vm6 = vcmp.gt.f32.partialorder %v594_v49, 0.0  ;;  %v769_v52 = vmul.f32 0.01, %v594_v49  ;;  %1446 = vmatmul.mubr.f32.gmra.mrb[18].mxu0 %v800_v51 }
 0x1d1   :  { %v802_v57 = vsel %vm738_vm5, %v1370_v46, %v770_v48 }
 0x1d2   :  { %v1373_v54 = vpop.f32.mrb[22].mxu1  ;;  %v801_v55 = vsel %vm737_vm6, %v594_v49, %v769_v52 }
 0x1d3   :  { %v772_v56 = vmul.f32 0.01, %v1373_v54  ;;  %v604_v43 = vpop.f32.mrb[23].mxu1  ;;  %1448 = vmatprep.mubr.f32.mxu0 %v801_v55  ;;  %vm740_vm7 = vcmp.gt.f32.partialorder %v1373_v54, 0.0 }
 0x1d4   :  { %vm739_vm8 = vcmp.gt.f32.partialorder %v604_v43, 0.0  ;;  %v771_v58 = vmul.f32 0.01, %v604_v43  ;;  %1449 = vmatmul.mubr.f32.gmra.mrb[20].mxu0 %v802_v57 }
 0x1d5   :  { %v804_v0 = vsel %vm740_vm7, %v1373_v54, %v772_v56 }
 0x1d6   :  { %v1376_v32 = vpop.f32.mrb[24].mxu1  ;;  %v803_v59 = vsel %vm739_vm8, %v604_v43, %v771_v58 }
 0x1d7   :  { %v774_v61 = vmul.f32 0.01, %v1376_v32  ;;  %v614_v62 = vpop.f32.mrb[25].mxu1  ;;  %1451 = vmatprep.mubr.f32.mxu0 %v803_v59  ;;  %vm742_vm9 = vcmp.gt.f32.partialorder %v1376_v32, 0.0 }
 0x1d8   :  { %vm741_vm10 = vcmp.gt.f32.partialorder %v614_v62, 0.0  ;;  %v773_v53 = vmul.f32 0.01, %v614_v62  ;;  %1452 = vmatmul.mubr.f32.gmra.mrb[22].mxu0 %v804_v0 }
 0x1d9   :  { %v806_v4 = vsel %vm742_vm9, %v1376_v32, %v774_v61 }
 0x1da   :  { %v1379_v40 = vpop.f32.mrb[26].mxu1  ;;  %v805_v1 = vsel %vm741_vm10, %v614_v62, %v773_v53 }
 0x1db   :  { %v776_v2 = vmul.f32 0.01, %v1379_v40  ;;  %v624_v3 = vpop.f32.mrb[27].mxu1  ;;  %1454 = vmatprep.mubr.f32.mxu0 %v805_v1  ;;  %vm744_vm11 = vcmp.gt.f32.partialorder %v1379_v40, 0.0 }
 0x1dc   :  { %vm743_vm12 = vcmp.gt.f32.partialorder %v624_v3, 0.0  ;;  %v775_v5 = vmul.f32 0.01, %v624_v3  ;;  %1455 = vmatmul.mubr.f32.gmra.mrb[24].mxu0 %v806_v4 }
 0x1dd   :  { %v808_v10 = vsel %vm744_vm11, %v1379_v40, %v776_v2 }
 0x1de   :  { %v1382_v50 = vpop.f32.mrb[28].mxu1  ;;  %v807_v63 = vsel %vm743_vm12, %v624_v3, %v775_v5 }
 0x1df   :  { %v778_v7 = vmul.f32 0.01, %v1382_v50  ;;  %v634_v8 = vpop.f32.mrb[29].mxu1  ;;  %1457 = vmatprep.mubr.f32.mxu0 %v807_v63  ;;  %vm746_vm13 = vcmp.gt.f32.partialorder %v1382_v50, 0.0 }
 0x1e0   :  { %vm745_vm14 = vcmp.gt.f32.partialorder %v634_v8, 0.0  ;;  %v777_v11 = vmul.f32 0.01, %v634_v8  ;;  %1458 = vmatmul.mubr.f32.gmra.mrb[26].mxu0 %v808_v10 }
 0x1e1   :  { %v810_v14 = vsel %vm746_vm13, %v1382_v50, %v778_v7 }
 0x1e2   :  { %v1385_v60 = vpop.f32.mrb[30].mxu1  ;;  %v809_v9 = vsel %vm745_vm14, %v634_v8, %v777_v11 }
 0x1e3   :  { %v780_v12 = vmul.f32 0.01, %v1385_v60  ;;  %v644_v13 = vpop.f32.mrb[31].mxu1  ;;  %1460 = vmatprep.mubr.f32.mxu0 %v809_v9  ;;  %vm748_vm15 = vcmp.gt.f32.partialorder %v1385_v60, 0.0 }
 0x1e4   :  { %vm747_vm0 = vcmp.gt.f32.partialorder %v644_v13, 0.0  ;;  %v779_v15 = vmul.f32 0.01, %v644_v13  ;;  %1461 = vmatmul.mubr.f32.gmra.mrb[28].mxu0 %v810_v14 }
 0x1e5   :  { %v812_v20 = vsel %vm748_vm15, %v1385_v60, %v780_v12 }
 0x1e6   :  { %v1388_v6 = vpop.f32.mrb[32].mxu1  ;;  %v811_v17 = vsel %vm747_vm0, %v644_v13, %v779_v15 }
 0x1e7   :  { %v782_v18 = vmul.f32 0.01, %v1388_v6  ;;  %v654_v19 = vpop.f32.mrb[33].mxu1  ;;  %1463 = vmatprep.mubr.f32.mxu0 %v811_v17  ;;  %vm750_vm1 = vcmp.gt.f32.partialorder %v1388_v6, 0.0 }
 0x1e8   :  { %vm749_vm2 = vcmp.gt.f32.partialorder %v654_v19, 0.0  ;;  %v781_v21 = vmul.f32 0.01, %v654_v19  ;;  %1464 = vmatmul.mubr.f32.gmra.mrb[30].mxu0 %v812_v20 }
 0x1e9   :  { %v814_v25 = vsel %vm750_vm1, %v1388_v6, %v782_v18  ;;  %vm1054_vm1 = vcmask 31744  }
 0x1ea   :  { %v1391_v16 = vpop.f32.mrb[34].mxu1  ;;  %v813_v22 = vsel %vm749_vm2, %v654_v19, %v781_v21 }
 0x1eb   :  { %v784_v23 = vmul.f32 0.01, %v1391_v16  ;;  %v664_v24 = vpop.f32.mrb[35].mxu1  ;;  %1466 = vmatprep.mubr.f32.mxu0 %v813_v22  ;;  %vm752_vm3 = vcmp.gt.f32.partialorder %v1391_v16, 0.0 }
 0x1ec   :  { %vm751_vm4 = vcmp.gt.f32.partialorder %v664_v24, 0.0  ;;  %v783_v27 = vmul.f32 0.01, %v664_v24  ;;  %1467 = vmatmul.mubr.f32.gmra.mrb[32].mxu0 %v814_v25 }
 0x1ed   :  { %v816_v28 = vsel %vm752_vm3, %v1391_v16, %v784_v23 }
 0x1ee   :  { %v1394_v29 = vpop.f32.mrb[36].mxu1  ;;  %v815_v30 = vsel %vm751_vm4, %v664_v24, %v783_v27 }
 0x1ef   :  { %v786_v26 = vmul.f32 0.01, %v1394_v29  ;;  %v674_v31 = vpop.f32.mrb[37].mxu1  ;;  %1469 = vmatprep.mubr.f32.mxu0 %v815_v30  ;;  %vm754_vm5 = vcmp.gt.f32.partialorder %v1394_v29, 0.0 }
 0x1f0   :  { %vm753_vm6 = vcmp.gt.f32.partialorder %v674_v31, 0.0  ;;  %v785_v33 = vmul.f32 0.01, %v674_v31  ;;  %1470 = vmatmul.mubr.f32.gmra.mrb[34].mxu0 %v816_v28 }
 0x1f1   :  { %v818_v39 = vsel %vm754_vm5, %v1394_v29, %v786_v26 }
 0x1f2   :  { %v1397_v35 = vpop.f32.mrb[38].mxu1  ;;  %v817_v36 = vsel %vm753_vm6, %v674_v31, %v785_v33 }
 0x1f3   :  { %v788_v37 = vmul.f32 0.01, %v1397_v35  ;;  %v684_v38 = vpop.f32.mrb[39].mxu1  ;;  %1472 = vmatprep.mubr.f32.mxu0 %v817_v36  ;;  %vm756_vm7 = vcmp.gt.f32.partialorder %v1397_v35, 0.0 }
 0x1f4   :  { %vm755_vm8 = vcmp.gt.f32.partialorder %v684_v38, 0.0  ;;  %v787_v41 = vmul.f32 0.01, %v684_v38  ;;  %1473 = vmatmul.mubr.f32.gmra.mrb[36].mxu0 %v818_v39 }
 0x1f5   :  { %v820_v46 = vsel %vm756_vm7, %v1397_v35, %v788_v37 }
 0x1f6   :  { %v1400_v42 = vpop.f32.mrb[40].mxu1  ;;  %v819_v44 = vsel %vm755_vm8, %v684_v38, %v787_v41 }
 0x1f7   :  { %v790_v45 = vmul.f32 0.01, %v1400_v42  ;;  %v694_v34 = vpop.f32.mrb[41].mxu1  ;;  %1475 = vmatprep.mubr.f32.mxu0 %v819_v44  ;;  %vm758_vm9 = vcmp.gt.f32.partialorder %v1400_v42, 0.0 }
 0x1f8   :  { %vm757_vm10 = vcmp.gt.f32.partialorder %v694_v34, 0.0  ;;  %v789_v47 = vmul.f32 0.01, %v694_v34  ;;  %1476 = vmatmul.mubr.f32.gmra.mrb[38].mxu0 %v820_v46 }
 0x1f9   :  { %v822_v54 = vsel %vm758_vm9, %v1400_v42, %v790_v45 }
 0x1fa   :  { %v1403_v48 = vpop.f32.mrb[42].mxu1  ;;  %v821_v49 = vsel %vm757_vm10, %v694_v34, %v789_v47 }
 0x1fb   :  { %v792_v51 = vmul.f32 0.01, %v1403_v48  ;;  %v704_v52 = vpop.f32.mrb[43].mxu1  ;;  %1478 = vmatprep.mubr.f32.mxu0 %v821_v49  ;;  %vm760_vm11 = vcmp.gt.f32.partialorder %v1403_v48, 0.0 }
 0x1fc   :  { %vm759_vm12 = vcmp.gt.f32.partialorder %v704_v52, 0.0  ;;  %v791_v55 = vmul.f32 0.01, %v704_v52  ;;  %1479 = vmatmul.mubr.f32.gmra.mrb[40].mxu0 %v822_v54 }
 0x1fd   :  { %v824_v32 = vsel %vm760_vm11, %v1403_v48, %v792_v51 }
 0x1fe   :  { %v1406_v56 = vpop.f32.mrb[44].mxu1  ;;  %v823_v43 = vsel %vm759_vm12, %v704_v52, %v791_v55 }
 0x1ff   :  { %v794_v57 = vmul.f32 0.01, %v1406_v56  ;;  %v714_v58 = vpop.f32.mrb[45].mxu1  ;;  %1481 = vmatprep.mubr.f32.mxu0 %v823_v43  ;;  %vm762_vm13 = vcmp.gt.f32.partialorder %v1406_v56, 0.0 }
 0x200   :  { %vm761_vm14 = vcmp.gt.f32.partialorder %v714_v58, 0.0  ;;  %v793_v59 = vmul.f32 0.01, %v714_v58  ;;  %1482 = vmatmul.mubr.f32.gmra.mrb[42].mxu0 %v824_v32 }
 0x201   :  { %v826_v40 = vsel %vm762_vm13, %v1406_v56, %v794_v57 }
 0x202   :  { %v1409_v61 = vpop.f32.mrb[46].mxu1  ;;  %v825_v62 = vsel %vm761_vm14, %v714_v58, %v793_v59 }
 0x203   :  { %v796_v0 = vmul.f32 0.01, %v1409_v61  ;;  %v724_v53 = vpop.f32.mrb[47].mxu1  ;;  %1484 = vmatprep.mubr.f32.mxu0 %v825_v62  ;;  %vm764_vm15 = vcmp.gt.f32.partialorder %v1409_v61, 0.0 }
 0x204   :  { %vm763_vm0 = vcmp.gt.f32.partialorder %v724_v53, 0.0  ;;  %v795_v1 = vmul.f32 0.01, %v724_v53  ;;  %1485 = vmatmul.mubr.f32.gmra.mrb[44].mxu0 %v826_v40 }
 0x205   :  { %v828_v3 = vsel %vm764_vm15, %v1409_v61, %v796_v0 }
 0x206   :  { %v827_v2 = vsel %vm763_vm0, %v724_v53, %v795_v1 }
 0x207   :  { %1487 = vmatprep.mubr.f32.mxu0 %v827_v2 }
 0x208   :  { %1488 = vmatmul.mubr.f32.gmra.mrb[46].mxu0 %v828_v3 }
 0x29f   :  { %v1444_v4 = vpop.f32.mrb[16].mxu0 }
 0x2a0   :  { %1056 = vst.msk [vmem:[%s2068_s2 + $0x8] sm:$0xff] %vm1054_vm1, %v1444_v4  ;;  %v895_v5 = vpop.f32.mrb[17].mxu0 }
 0x2a1   :  { %1055 = vst.msk [vmem:[%s2068_s2] sm:$0xff] %vm1054_vm1, %v895_v5 }
 0x2a3   :  { %v1447_v50 = vpop.f32.mrb[18].mxu0 }
 0x2a4   :  { %1058 = vst.msk [vmem:[%s2068_s2 + $0x18] sm:$0xff] %vm1054_vm1, %v1447_v50  ;;  %v905_v63 = vpop.f32.mrb[19].mxu0 }
 0x2a5   :  { %1057 = vst.msk [vmem:[%s2068_s2 + $0x10] sm:$0xff] %vm1054_vm1, %v905_v63 }
 0x2a7   :  { %v1450_v7 = vpop.f32.mrb[20].mxu0 }
 0x2a8   :  { %1060 = vst.msk [vmem:[%s2068_s2 + $0x28] sm:$0xff] %vm1054_vm1, %v1450_v7  ;;  %v915_v8 = vpop.f32.mrb[21].mxu0 }
 0x2a9   :  { %1059 = vst.msk [vmem:[%s2068_s2 + $0x20] sm:$0xff] %vm1054_vm1, %v915_v8 }
 0x2ab   :  { %v1453_v10 = vpop.f32.mrb[22].mxu0 }
 0x2ac   :  { %1062 = vst.msk [vmem:[%s2068_s2 + $0x38] sm:$0xff] %vm1054_vm1, %v1453_v10  ;;  %v925_v11 = vpop.f32.mrb[23].mxu0 }
 0x2ad   :  { %1061 = vst.msk [vmem:[%s2068_s2 + $0x30] sm:$0xff] %vm1054_vm1, %v925_v11 }
 0x2af   :  { %v1456_v60 = vpop.f32.mrb[24].mxu0 }
 0x2b0   :  { %1064 = vst.msk [vmem:[%s2068_s2 + $0x48] sm:$0xff] %vm1054_vm1, %v1456_v60  ;;  %v935_v9 = vpop.f32.mrb[25].mxu0 }
 0x2b1   :  { %1063 = vst.msk [vmem:[%s2068_s2 + $0x40] sm:$0xff] %vm1054_vm1, %v935_v9 }
 0x2b3   :  { %v1459_v12 = vpop.f32.mrb[26].mxu0 }
 0x2b4   :  { %1066 = vst.msk [vmem:[%s2068_s2 + $0x58] sm:$0xff] %vm1054_vm1, %v1459_v12  ;;  %v945_v13 = vpop.f32.mrb[27].mxu0 }
 0x2b5   :  { %1065 = vst.msk [vmem:[%s2068_s2 + $0x50] sm:$0xff] %vm1054_vm1, %v945_v13 }
 0x2b7   :  { %v1462_v14 = vpop.f32.mrb[28].mxu0 }
 0x2b8   :  { %1068 = vst.msk [vmem:[%s2068_s2 + $0x68] sm:$0xff] %vm1054_vm1, %v1462_v14  ;;  %v955_v15 = vpop.f32.mrb[29].mxu0 }
 0x2b9   :  { %1067 = vst.msk [vmem:[%s2068_s2 + $0x60] sm:$0xff] %vm1054_vm1, %v955_v15 }
 0x2bb   :  { %v1465_v6 = vpop.f32.mrb[30].mxu0 }
 0x2bc   :  { %1070 = vst.msk [vmem:[%s2068_s2 + $0x78] sm:$0xff] %vm1054_vm1, %v1465_v6  ;;  %v965_v17 = vpop.f32.mrb[31].mxu0 }
 0x2bd   :  { %1069 = vst.msk [vmem:[%s2068_s2 + $0x70] sm:$0xff] %vm1054_vm1, %v965_v17 }
 0x2bf   :  { %v1468_v18 = vpop.f32.mrb[32].mxu0 }
 0x2c0   :  { %1072 = vst.msk [vmem:[%s2068_s2 + $0x88] sm:$0xff] %vm1054_vm1, %v1468_v18  ;;  %v975_v19 = vpop.f32.mrb[33].mxu0 }
 0x2c1   :  { %1071 = vst.msk [vmem:[%s2068_s2 + $0x80] sm:$0xff] %vm1054_vm1, %v975_v19 }
 0x2c3   :  { %v1471_v20 = vpop.f32.mrb[34].mxu0 }
 0x2c4   :  { %1074 = vst.msk [vmem:[%s2068_s2 + $0x98] sm:$0xff] %vm1054_vm1, %v1471_v20  ;;  %v985_v21 = vpop.f32.mrb[35].mxu0 }
 0x2c5   :  { %1073 = vst.msk [vmem:[%s2068_s2 + $0x90] sm:$0xff] %vm1054_vm1, %v985_v21 }
 0x2c7   :  { %v1474_v16 = vpop.f32.mrb[36].mxu0 }
 0x2c8   :  { %1076 = vst.msk [vmem:[%s2068_s2 + $0xa8] sm:$0xff] %vm1054_vm1, %v1474_v16  ;;  %v995_v22 = vpop.f32.mrb[37].mxu0 }
 0x2c9   :  { %1075 = vst.msk [vmem:[%s2068_s2 + $0xa0] sm:$0xff] %vm1054_vm1, %v995_v22 }
 0x2cb   :  { %v1477_v23 = vpop.f32.mrb[38].mxu0 }
 0x2cc   :  { %1078 = vst.msk [vmem:[%s2068_s2 + $0xb8] sm:$0xff] %vm1054_vm1, %v1477_v23  ;;  %v1005_v24 = vpop.f32.mrb[39].mxu0 }
 0x2cd   :  { %1077 = vst.msk [vmem:[%s2068_s2 + $0xb0] sm:$0xff] %vm1054_vm1, %v1005_v24 }
 0x2cf   :  { %v1480_v25 = vpop.f32.mrb[40].mxu0 }
 0x2d0   :  { %1080 = vst.msk [vmem:[%s2068_s2 + $0xc8] sm:$0xff] %vm1054_vm1, %v1480_v25  ;;  %v1015_v27 = vpop.f32.mrb[41].mxu0 }
 0x2d1   :  { %1079 = vst.msk [vmem:[%s2068_s2 + $0xc0] sm:$0xff] %vm1054_vm1, %v1015_v27 }
 0x2d3   :  { %v1483_v29 = vpop.f32.mrb[42].mxu0 }
 0x2d4   :  { %1082 = vst.msk [vmem:[%s2068_s2 + $0xd8] sm:$0xff] %vm1054_vm1, %v1483_v29  ;;  %v1025_v30 = vpop.f32.mrb[43].mxu0 }
 0x2d5   :  { %1081 = vst.msk [vmem:[%s2068_s2 + $0xd0] sm:$0xff] %vm1054_vm1, %v1025_v30 }
 0x2d7   :  { %v1486_v26 = vpop.f32.mrb[44].mxu0 }
 0x2d8   :  { %1084 = vst.msk [vmem:[%s2068_s2 + $0xe8] sm:$0xff] %vm1054_vm1, %v1486_v26  ;;  %v1035_v31 = vpop.f32.mrb[45].mxu0 }
 0x2d9   :  { %1083 = vst.msk [vmem:[%s2068_s2 + $0xe0] sm:$0xff] %vm1054_vm1, %v1035_v31 }
 0x2db   :  { %v1489_v28 = vpop.f32.mrb[46].mxu0 }
 0x2dc   :  { %1086 = vst.msk [vmem:[%s2068_s2 + $0xf8] sm:$0xff] %vm1054_vm1, %v1489_v28  ;;  %v1045_v33 = vpop.f32.mrb[47].mxu0 }
 0x2dd   :  { %1085 = vst.msk [vmem:[%s2068_s2 + $0xf0] sm:$0xff] %vm1054_vm1, %v1045_v33 }

</bundles_post_ra>
